<compile_context>
chip_gen: v7x
topology: tpu7x:2x2x1
jax: 0.10.0
libtpu: 0.0.40
codegen_flags: <defaults>
</compile_context>

<pallas_src>
import math
import functools

import jax
import jax.numpy as jnp
from jax import lax
from jax.experimental import pallas as pl
from jax.experimental.pallas import tpu as pltpu


# ---------------------------------------------------------------------------
# Hardware-derived knobs
# ---------------------------------------------------------------------------
def _vmem_limit_bytes():
    """Scoped-VMEM budget: ~85% of this generation's physical VMEM."""
    try:
        cap = int(pltpu.get_tpu_info().vmem_capacity_bytes)
    except Exception:
        cap = 64 * 1024 * 1024  # conservative fallback (v7x physical size)
    return int(cap * 0.85)


@functools.lru_cache(maxsize=None)
def _single_buffer_supported():
    """Probe whether BlockSpec(pipeline_mode=pl.Buffered(1)) lowers end-to-end.

    Grid-invariant weight blocks don't need double buffering; single-buffering
    them halves their VMEM footprint (matters most on v7x's 64 MiB VMEM).
    """
    if not hasattr(pl, "Buffered"):
        return False
    try:
        spec = pl.BlockSpec((8, 128), lambda i: (0, 0), pipeline_mode=pl.Buffered(1))

        def _probe(w_ref, o_ref):
            o_ref[...] = w_ref[...]

        out = pl.pallas_call(
            _probe,
            out_shape=jax.ShapeDtypeStruct((8, 128), jnp.float32),
            grid=(1,),
            in_specs=[spec],
            out_specs=pl.BlockSpec((8, 128), lambda i: (0, 0)),
        )(jnp.zeros((8, 128), jnp.float32))
        jax.block_until_ready(out)
        return True
    except Exception:
        return False


def _weight_spec(block_shape, single_buffer):
    """BlockSpec for a grid-invariant (weight / bias) operand."""
    index_map = lambda *args: (0,) * len(block_shape)
    if single_buffer:
        return pl.BlockSpec(block_shape, index_map, pipeline_mode=pl.Buffered(1))
    return pl.BlockSpec(block_shape, index_map)


# ---------------------------------------------------------------------------
# In-kernel helpers (all f32 elementwise math)
# ---------------------------------------------------------------------------
def _layernorm(x, gamma, beta, eps=1e-5):
    mean = jnp.mean(x, axis=-1, keepdims=True)
    var = jnp.mean((x - mean) ** 2, axis=-1, keepdims=True)
    return (x - mean) * lax.rsqrt(var + eps) * gamma + beta


def _gelu_exact(x):
    # torch.nn.GELU() default = exact erf GELU (tanh-approx would route to the
    # EUP, but changes the module's numerics; keep erf for parity).
    return 0.5 * x * (1.0 + lax.erf(x * (1.0 / math.sqrt(2.0))))


# ---------------------------------------------------------------------------
# Kernel 1: LayerNorm1 + fused QKV projection, row-tiled over (B, T).
# Emits q/k/v already head-split, bf16, as one (B, 3H, T, hd) array.
# ---------------------------------------------------------------------------
def qkv_kernel(x_ref, ln1g_ref, ln1b_ref, wqkv_ref, bqkv_ref, qkv_ref):
    n_groups = qkv_ref.shape[1]        # 3 * n_head
    hd = qkv_ref.shape[3]

    x = x_ref[0]                                            # (tr, C) f32
    h = _layernorm(x, ln1g_ref[0], ln1b_ref[0])             # f32
    qkv = jnp.dot(h.astype(jnp.bfloat16), wqkv_ref[...],
                  preferred_element_type=jnp.float32) + bqkv_ref[0]  # (tr, 3C) f32
    qkv = qkv.astype(jnp.bfloat16)

    # Head split in-kernel via static lane slices + per-head stores: hides the
    # (tr, 3C) -> (3H, tr, hd) relayout under the MXU work instead of paying an
    # extra HBM round trip for it in XLA.
    for g in range(n_groups):
        qkv_ref[0, g, :, :] = qkv[:, g * hd:(g + 1) * hd]


# ---------------------------------------------------------------------------
# Kernel 2: flash-style causal attention + proj + residual + LN2 + MLP + residual
# grid = (B, T//TQ, T//TK); kv axis is the ("arbitrary") reduction axis.
# ---------------------------------------------------------------------------
def attn_mlp_kernel(x_ref, q_ref, k_ref, v_ref,
                    wp_ref, bp_ref, ln2g_ref, ln2b_ref,
                    w1_ref, b1_ref, w2_ref, b2_ref,
                    out_ref,
                    m_sc, l_sc, acc_sc):
    qi = pl.program_id(1)
    ki = pl.program_id(2)
    nk = pl.num_programs(2)
    n_head = q_ref.shape[1]
    tq = q_ref.shape[2]
    tk = k_ref.shape[2]

    # ---- init online-softmax state at the first KV tile --------------------
    @pl.when(ki == 0)
    def _():
        m_sc[...] = jnp.full(m_sc.shape, -jnp.inf, dtype=jnp.float32)
        l_sc[...] = jnp.zeros(l_sc.shape, jnp.float32)
        acc_sc[...] = jnp.zeros(acc_sc.shape, jnp.float32)

    # ---- causal skip: KV tile contributes iff its first key position is not
    #      past the last query position of this Q tile.  The k/v index_maps
    #      are clamped to the same boundary, so skipped tiles are never DMA'd.
    @pl.when(ki * tk <= qi * tq + (tq - 1))
    def _():
        q = q_ref[0]            # (H, TQ, hd) bf16, already scaled by 1/sqrt(hd)
        k = k_ref[0]            # (H, TK, hd) bf16
        v = v_ref[0]            # (H, TK, hd) bf16

        s = jnp.einsum('hqd,hkd->hqk', q, k,
                       preferred_element_type=jnp.float32)           # (H,TQ,TK) f32

        # tile-local causal mask (broadcast over heads)
        qpos = qi * tq + lax.broadcasted_iota(jnp.int32, (1, tq, tk), 1)
        kpos = ki * tk + lax.broadcasted_iota(jnp.int32, (1, tq, tk), 2)
        s = jnp.where(qpos >= kpos, s, -jnp.inf)

        # Running stats kept lane-dense (H, TQ): the alpha-exp / rescale
        # housekeeping touches ~H*TQ/1024 vregs instead of ~H*TQ/8.
        m_prev = m_sc[...]
        m_new = jnp.maximum(m_prev, s.max(axis=-1))                   # (H, TQ)
        alpha = jnp.exp(m_prev - m_new)                               # (H, TQ)
        p = jnp.exp(s - m_new[:, :, None])                            # (H, TQ, TK)
        l_sc[...] = alpha * l_sc[...] + p.sum(axis=-1)
        acc_sc[...] = alpha[:, :, None] * acc_sc[...] + jnp.einsum(
            'hqk,hkd->hqd', p.astype(jnp.bfloat16), v,
            preferred_element_type=jnp.float32)
        m_sc[...] = m_new

    # ---- epilogue at the last KV tile: proj, residual, LN2, MLP, residual ---
    @pl.when(ki == nk - 1)
    def _():
        x = x_ref[0]                                                  # (TQ, C) f32
        inv_l = 1.0 / l_sc[...]                   # exact reciprocal; (H, TQ) is tiny
        y = acc_sc[...] * inv_l[:, :, None]                           # (H, TQ, hd) f32

        # Merge heads along lanes once, then a single C-deep projection matmul
        # (fills the MXU instead of H hd-deep matmuls + a cross-head reduce).
        y_cat = jnp.concatenate([y[h] for h in range(n_head)], axis=-1)   # (TQ, C)
        yproj = jnp.dot(y_cat.astype(jnp.bfloat16), wp_ref[...],
                        preferred_element_type=jnp.float32) + bp_ref[0]

        x1 = x + yproj                                                # residual 1

        h2 = _layernorm(x1, ln2g_ref[0], ln2b_ref[0])
        # TODO(synk): for very large C on v7x (W1+W2 bf16 > ~40 MiB) tile the 4C
        # hidden dim over an extra grid axis instead of keeping W1/W2 resident.
        m = jnp.dot(h2.astype(jnp.bfloat16), w1_ref[...],
                    preferred_element_type=jnp.float32) + b1_ref[0]
        m = _gelu_exact(m)
        m = jnp.dot(m.astype(jnp.bfloat16), w2_ref[...],
                    preferred_element_type=jnp.float32) + b2_ref[0]

        out_ref[0] = x1 + m                                           # residual 2


# ---------------------------------------------------------------------------
# Wrapper
# ---------------------------------------------------------------------------
def transformer_block(x, params, n_head, *, q_tile=128, kv_tile=256, row_tile=512):
    """minGPT Block forward.  Defaults sized for v6e/v7x (256-wide MXU); on v5e
    kv_tile=128 already saturates its 128-wide MXU and keeps VMEM small."""
    B, T, C = x.shape
    assert C % n_head == 0
    hd = C // n_head
    f32, bf16 = jnp.float32, jnp.bfloat16

    tq = min(q_tile, T)
    tk = min(kv_tile, T)
    tr = min(row_tile, T)
    assert T % tq == 0 and T % tk == 0 and T % tr == 0

    vmem_limit = _vmem_limit_bytes()
    single_buf = _single_buffer_supported()

    # ---- fused QKV weight / bias; fold the 1/sqrt(hd) scale into Wq / bq ----
    scale = 1.0 / math.sqrt(hd)
    wqkv = jnp.concatenate([params["wq"] * scale, params["wk"], params["wv"]],
                           axis=1).astype(bf16)                           # (C, 3C)
    bqkv = jnp.concatenate([params["bq"] * scale, params["bk"], params["bv"]]
                           ).reshape(1, 3 * C).astype(f32)
    ln1g = params["ln1_g"].reshape(1, C).astype(f32)
    ln1b = params["ln1_b"].reshape(1, C).astype(f32)

    # Kernel 1: LN1 + fused QKV matmul; emits q/k/v head-split & bf16 directly.
    qkv = pl.pallas_call(
        qkv_kernel,
        out_shape=jax.ShapeDtypeStruct((B, 3 * n_head, T, hd), bf16),
        grid_spec=pltpu.PrefetchScalarGridSpec(
            num_scalar_prefetch=0,
            grid=(B, T // tr),
            in_specs=[
                pl.BlockSpec((1, tr, C), lambda b, r: (b, r, 0)),         # x rows
                _weight_spec((1, C), single_buf),                         # ln1 gamma
                _weight_spec((1, C), single_buf),                         # ln1 beta
                _weight_spec((C, 3 * C), single_buf),                     # fused W_qkv
                _weight_spec((1, 3 * C), single_buf),                     # fused b_qkv
            ],
            out_specs=pl.BlockSpec((1, 3 * n_head, tr, hd),
                                   lambda b, r: (b, 0, r, 0)),
        ),
        compiler_params=pltpu.CompilerParams(
            dimension_semantics=("parallel", "parallel"),
            vmem_limit_bytes=vmem_limit),
    )(x, ln1g, ln1b, wqkv, bqkv)

    wp = params["wp"].astype(bf16)                   # (C, C)
    bp = params["bp"].reshape(1, C).astype(f32)
    ln2g = params["ln2_g"].reshape(1, C).astype(f32)
    ln2b = params["ln2_b"].reshape(1, C).astype(f32)
    w1 = params["w1"].astype(bf16)
    b1 = params["b1"].reshape(1, 4 * C).astype(f32)
    w2 = params["w2"].astype(bf16)
    b2 = params["b2"].reshape(1, C).astype(f32)

    # Causal clamp: once a KV tile is fully masked, repeat the previous block
    # index so Pallas issues no new DMA for it (compute is skipped by pl.when).
    def _kv_block(i, j):
        return jnp.minimum(j, (i * tq + tq - 1) // tk)

    # q / k / v are views (head-block 0 / 1 / 2) of the same (B, 3H, T, hd) array.
    q_spec = pl.BlockSpec((1, n_head, tq, hd), lambda b, i, j: (b, 0, i, 0))
    k_spec = pl.BlockSpec((1, n_head, tk, hd), lambda b, i, j: (b, 1, _kv_block(i, j), 0))
    v_spec = pl.BlockSpec((1, n_head, tk, hd), lambda b, i, j: (b, 2, _kv_block(i, j), 0))

    # TODO(synk): on v7x (megacore), causal work grows with the q-tile index; if B
    # is not the axis split across cores, permute the q-tile visit order in these
    # index_maps (pair i with nq-1-i) to balance the two TensorCores.
    out = pl.pallas_call(
        attn_mlp_kernel,
        out_shape=jax.ShapeDtypeStruct((B, T, C), f32),
        grid_spec=pltpu.PrefetchScalarGridSpec(
            num_scalar_prefetch=0,
            grid=(B, T // tq, T // tk),
            in_specs=[
                pl.BlockSpec((1, tq, C), lambda b, i, j: (b, i, 0)),      # x (residual)
                q_spec, k_spec, v_spec,
                _weight_spec((C, C), single_buf),                         # Wp
                _weight_spec((1, C), single_buf),                         # bp
                _weight_spec((1, C), single_buf),                         # ln2 gamma
                _weight_spec((1, C), single_buf),                         # ln2 beta
                _weight_spec((C, 4 * C), single_buf),                     # W1
                _weight_spec((1, 4 * C), single_buf),                     # b1
                _weight_spec((4 * C, C), single_buf),                     # W2
                _weight_spec((1, C), single_buf),                         # b2
            ],
            out_specs=pl.BlockSpec((1, tq, C), lambda b, i, j: (b, i, 0)),
            scratch_shapes=[
                pltpu.VMEM((n_head, tq), f32),        # running max m  (lane-dense)
                pltpu.VMEM((n_head, tq), f32),        # running denom l (lane-dense)
                pltpu.VMEM((n_head, tq, hd), f32),    # output accumulator
            ],
        ),
        compiler_params=pltpu.CompilerParams(
            dimension_semantics=("parallel", "parallel", "arbitrary"),
            vmem_limit_bytes=vmem_limit),
    )(x, qkv, qkv, qkv, wp, bp, ln2g, ln2b, w1, b1, w2, b2)
    return out


# ---------------------------------------------------------------------------
# Pure-JAX reference (mirrors the PyTorch forward, dropout = identity, f32)
# ---------------------------------------------------------------------------
def block_reference(x, p, n_head):
    def ln(z, g, b):
        mu = z.mean(-1, keepdims=True)
        var = ((z - mu) ** 2).mean(-1, keepdims=True)
        return (z - mu) / jnp.sqrt(var + 1e-5) * g + b

    B, T, C = x.shape
    hd = C // n_head

    h = ln(x, p["ln1_g"], p["ln1_b"])
    q = h @ p["wq"] + p["bq"]
    k = h @ p["wk"] + p["bk"]
    v = h @ p["wv"] + p["bv"]
    q = q.reshape(B, T, n_head, hd).transpose(0, 2, 1, 3)
    k = k.reshape(B, T, n_head, hd).transpose(0, 2, 1, 3)
    v = v.reshape(B, T, n_head, hd).transpose(0, 2, 1, 3)
    att = (q @ jnp.swapaxes(k, -2, -1)) * (1.0 / math.sqrt(hd))
    mask = jnp.tril(jnp.ones((T, T)))
    att = jnp.where(mask == 0, -jnp.inf, att)
    att = jax.nn.softmax(att, axis=-1)
    y = (att @ v).transpose(0, 2, 1, 3).reshape(B, T, C)
    y = y @ p["wp"] + p["bp"]
    x = x + y

    h2 = ln(x, p["ln2_g"], p["ln2_b"])
    m = h2 @ p["w1"] + p["b1"]
    m = 0.5 * m * (1.0 + lax.erf(m / jnp.sqrt(2.0)))
    m = m @ p["w2"] + p["b2"]
    return x + m


# ---------------------------------------------------------------------------
def make_params(key, n_embd):
    ks = jax.random.split(key, 6)
    std = 0.02
    C = n_embd
    return {
        "ln1_g": jnp.ones((C,), jnp.float32),
        "ln1_b": jnp.zeros((C,), jnp.float32),
        "ln2_g": jnp.ones((C,), jnp.float32),
        "ln2_b": jnp.zeros((C,), jnp.float32),
        "wq": std * jax.random.normal(ks[0], (C, C), jnp.float32),
        "bq": jnp.zeros((C,), jnp.float32),
        "wk": std * jax.random.normal(ks[1], (C, C), jnp.float32),
        "bk": jnp.zeros((C,), jnp.float32),
        "wv": std * jax.random.normal(ks[2], (C, C), jnp.float32),
        "bv": jnp.zeros((C,), jnp.float32),
        "wp": std * jax.random.normal(ks[3], (C, C), jnp.float32),
        "bp": jnp.zeros((C,), jnp.float32),
        "w1": std * jax.random.normal(ks[4], (C, 4 * C), jnp.float32),
        "b1": jnp.zeros((4 * C,), jnp.float32),
        "w2": std * jax.random.normal(ks[5], (4 * C, C), jnp.float32),
        "b2": jnp.zeros((C,), jnp.float32),
    }


if __name__ == "__main__":
    # small shapes; tiles chosen so the flash loop / causal DMA-clamp / skip
    # paths are exercised (T=16 with 8-wide q/kv tiles -> 2x2 kv grid).
    B, T, C, n_head = 2, 16, 32, 4

    key = jax.random.PRNGKey(0)
    kx, kp = jax.random.split(key)
    x = jax.random.normal(kx, (B, T, C), jnp.float32)
    params = make_params(kp, C)

    out = transformer_block(x, params, n_head, q_tile=8, kv_tile=8, row_tile=8)
    out = jax.block_until_ready(out)

    ref = block_reference(x, params, n_head)
    assert out.shape == (B, T, C)
    err = jnp.max(jnp.abs(out - ref))
    # bf16 matmul operands (f32 accumulation) => relaxed tolerance vs f32 reference
    assert jnp.allclose(out, ref, rtol=1e-2, atol=1e-2), f"max abs err = {err}"

    print("KERNEL_OK")
</pallas_src>

<mosaic_0001>
module attributes {stable_mosaic.version = 11 : i64} {
  func.func @_probe(%arg0: i32, %arg1: memref<8x128xf32, #tpu.memory_space<vmem>>, %arg2: memref<8x128xf32, #tpu.memory_space<vmem>>) attributes {dimension_semantics = [#tpu.dimension_semantics<arbitrary>], iteration_bounds = array<i64: 1>, scalar_prefetch = 0 : i64, scratch_operands = 0 : i64, tpu.core_type = #tpu.core_type<tc>, window_params = [{pipeline_mode = #tpu.pipeline_mode<synchronous>, transform_indices = @transform_0, window_bounds = array<i64: 8, 128>}, {pipeline_mode = #tpu.pipeline_mode<synchronous>, transform_indices = @transform_1, window_bounds = array<i64: 8, 128>}]} {
    %c0 = arith.constant 0 : index
    %c0_0 = arith.constant 0 : index
    %0 = vector.load %arg1[%c0, %c0_0] : memref<8x128xf32, #tpu.memory_space<vmem>>, vector<8x128xf32>
    %c0_1 = arith.constant 0 : index
    %c0_2 = arith.constant 0 : index
    %1 = vector.load %arg2[%c0_1, %c0_2] : memref<8x128xf32, #tpu.memory_space<vmem>>, vector<8x128xf32>
    tpu.vector_store %arg2[%c0_1, %c0_2], %0 {strides = array<i32>} : memref<8x128xf32, #tpu.memory_space<vmem>>, vector<8x128xf32>,
    return
  }
  func.func @transform_0(%arg0: i32) -> (i32, i32) {
    %c0_i32 = arith.constant 0 : i32
    %c0_i32_0 = arith.constant 0 : i32
    %c0_i32_1 = arith.constant 0 : i32
    return %c0_i32, %c0_i32_0 : i32, i32
  }
  func.func @transform_1(%arg0: i32) -> (i32, i32) {
    %c0_i32 = arith.constant 0 : i32
    %c0_i32_0 = arith.constant 0 : i32
    %c0_i32_1 = arith.constant 0 : i32
    return %c0_i32, %c0_i32_0 : i32, i32
  }
}

module attributes {stable_mosaic.version = 11 : i64} {
  func.func @qkv_kernel(%arg0: i32, %arg1: i32, %arg2: memref<1x8x32xf32, #tpu.memory_space<vmem>>, %arg3: memref<1x32xf32, #tpu.memory_space<vmem>>, %arg4: memref<1x32xf32, #tpu.memory_space<vmem>>, %arg5: memref<32x96xbf16, #tpu.memory_space<vmem>>, %arg6: memref<1x96xf32, #tpu.memory_space<vmem>>, %arg7: memref<1x12x8x8xbf16, #tpu.memory_space<vmem>>) attributes {dimension_semantics = [#tpu.dimension_semantics<parallel>, #tpu.dimension_semantics<parallel>], iteration_bounds = array<i64: 2, 2>, scalar_prefetch = 0 : i64, scratch_operands = 0 : i64, tpu.core_type = #tpu.core_type<tc>, window_params = [{transform_indices = @transform_0, window_bounds = array<i64: 1, 8, 32>}, {pipeline_mode = #tpu.pipeline_mode<synchronous>, transform_indices = @transform_1, window_bounds = array<i64: 1, 32>}, {pipeline_mode = #tpu.pipeline_mode<synchronous>, transform_indices = @transform_2, window_bounds = array<i64: 1, 32>}, {pipeline_mode = #tpu.pipeline_mode<synchronous>, transform_indices = @transform_3, window_bounds = array<i64: 32, 96>}, {pipeline_mode = #tpu.pipeline_mode<synchronous>, transform_indices = @transform_4, window_bounds = array<i64: 1, 96>}, {transform_indices = @transform_5, window_bounds = array<i64: 1, 12, 8, 8>}]} {
    %c0 = arith.constant 0 : index
    %c0_0 = arith.constant 0 : index
    %c0_1 = arith.constant 0 : index
    %0 = vector.load %arg2[%c0, %c0_0, %c0_1] : memref<1x8x32xf32, #tpu.memory_space<vmem>>, vector<1x8x32xf32>
    %1 = vector.shape_cast %0 : vector<1x8x32xf32> to vector<8x32xf32>
    %c0_2 = arith.constant 0 : index
    %c0_3 = arith.constant 0 : index
    %2 = vector.load %arg3[%c0_2, %c0_3] : memref<1x32xf32, #tpu.memory_space<vmem>>, vector<1x32xf32>
    %3 = vector.shape_cast %2 : vector<1x32xf32> to vector<32xf32>
    %c0_4 = arith.constant 0 : index
    %c0_5 = arith.constant 0 : index
    %4 = vector.load %arg4[%c0_4, %c0_5] : memref<1x32xf32, #tpu.memory_space<vmem>>, vector<1x32xf32>
    %5 = vector.shape_cast %4 : vector<1x32xf32> to vector<32xf32>
    %cst = arith.constant dense<0.000000e+00> : vector<8xf32>
    %6 = vector.multi_reduction <add>, %1, %cst [1] : vector<8x32xf32> to vector<8xf32>
    %7 = vector.shape_cast %6 : vector<8xf32> to vector<8x1xf32>
    %cst_6 = arith.constant 3.200000e+01 : f32
    %8 = vector.broadcast %cst_6 : f32 to vector<8x1xf32>
    %9 = arith.divf %7, %8 : vector<8x1xf32>
    %10 = vector.broadcast %9 : vector<8x1xf32> to vector<8x32xf32>
    %11 = arith.subf %1, %10 : vector<8x32xf32>
    %12 = arith.mulf %11, %11 : vector<8x32xf32>
    %cst_7 = arith.constant dense<0.000000e+00> : vector<8xf32>
    %13 = vector.multi_reduction <add>, %12, %cst_7 [1] : vector<8x32xf32> to vector<8xf32>
    %14 = vector.shape_cast %13 : vector<8xf32> to vector<8x1xf32>
    %cst_8 = arith.constant 3.200000e+01 : f32
    %15 = vector.broadcast %cst_8 : f32 to vector<8x1xf32>
    %16 = arith.divf %14, %15 : vector<8x1xf32>
    %17 = vector.broadcast %9 : vector<8x1xf32> to vector<8x32xf32>
    %18 = arith.subf %1, %17 : vector<8x32xf32>
    %cst_9 = arith.constant 9.99999974E-6 : f32
    %19 = vector.broadcast %cst_9 : f32 to vector<8x1xf32>
    %20 = arith.addf %16, %19 : vector<8x1xf32>
    %21 = math.rsqrt %20 : vector<8x1xf32>
    %22 = vector.broadcast %21 : vector<8x1xf32> to vector<8x32xf32>
    %23 = arith.mulf %18, %22 : vector<8x32xf32>
    %24 = vector.shape_cast %3 : vector<32xf32> to vector<1x32xf32>
    %25 = vector.broadcast %24 : vector<1x32xf32> to vector<8x32xf32>
    %26 = arith.mulf %23, %25 : vector<8x32xf32>
    %27 = vector.shape_cast %5 : vector<32xf32> to vector<1x32xf32>
    %28 = vector.broadcast %27 : vector<1x32xf32> to vector<8x32xf32>
    %29 = arith.addf %26, %28 : vector<8x32xf32>
    %30 = arith.truncf %29 : vector<8x32xf32> to vector<8x32xbf16>
    %c0_10 = arith.constant 0 : index
    %c0_11 = arith.constant 0 : index
    %31 = vector.load %arg5[%c0_10, %c0_11] : memref<32x96xbf16, #tpu.memory_space<vmem>>, vector<32x96xbf16>
    %cst_12 = arith.constant dense<0.000000e+00> : vector<8x96xf32>
    %32 = tpu.matmul %30, %31, %cst_12 {dimension_numbers = #tpu.dot_dimension_numbers<[1], [0], [0], [1], [0, 0, 1, 1], [], []>} : vector<8x32xbf16>, vector<32x96xbf16>, vector<8x96xf32> -> vector<8x96xf32>
    %c0_13 = arith.constant 0 : index
    %c0_14 = arith.constant 0 : index
    %33 = vector.load %arg6[%c0_13, %c0_14] : memref<1x96xf32, #tpu.memory_space<vmem>>, vector<1x96xf32>
    %34 = vector.shape_cast %33 : vector<1x96xf32> to vector<96xf32>
    %35 = vector.shape_cast %34 : vector<96xf32> to vector<1x96xf32>
    %36 = vector.broadcast %35 : vector<1x96xf32> to vector<8x96xf32>
    %37 = arith.addf %32, %36 : vector<8x96xf32>
    %38 = arith.truncf %37 : vector<8x96xf32> to vector<8x96xbf16>
    %39 = vector.extract_strided_slice %38 {offsets = [0, 0], sizes = [8, 8], strides = [1, 1]} : vector<8x96xbf16> to vector<8x8xbf16>
    %c0_15 = arith.constant 0 : index
    %c0_16 = arith.constant 0 : index
    %c0_17 = arith.constant 0 : index
    %c0_18 = arith.constant 0 : index
    %40 = vector.load %arg7[%c0_15, %c0_16, %c0_17, %c0_18] : memref<1x12x8x8xbf16, #tpu.memory_space<vmem>>, vector<1x1x8x8xbf16>
    %41 = vector.shape_cast %40 : vector<1x1x8x8xbf16> to vector<8x8xbf16>
    %42 = vector.shape_cast %39 : vector<8x8xbf16> to vector<1x1x8x8xbf16>
    tpu.vector_store %arg7[%c0_15, %c0_16, %c0_17, %c0_18], %42 {strides = array<i32>} : memref<1x12x8x8xbf16, #tpu.memory_space<vmem>>, vector<1x1x8x8xbf16>,
    %43 = vector.extract_strided_slice %38 {offsets = [0, 8], sizes = [8, 8], strides = [1, 1]} : vector<8x96xbf16> to vector<8x8xbf16>
    %c0_19 = arith.constant 0 : index
    %c1 = arith.constant 1 : index
    %c0_20 = arith.constant 0 : index
    %c0_21 = arith.constant 0 : index
    %44 = vector.load %arg7[%c0_19, %c1, %c0_20, %c0_21] : memref<1x12x8x8xbf16, #tpu.memory_space<vmem>>, vector<1x1x8x8xbf16>
    %45 = vector.shape_cast %44 : vector<1x1x8x8xbf16> to vector<8x8xbf16>
    %46 = vector.shape_cast %43 : vector<8x8xbf16> to vector<1x1x8x8xbf16>
    tpu.vector_store %arg7[%c0_19, %c1, %c0_20, %c0_21], %46 {strides = array<i32>} : memref<1x12x8x8xbf16, #tpu.memory_space<vmem>>, vector<1x1x8x8xbf16>,
    %47 = vector.extract_strided_slice %38 {offsets = [0, 16], sizes = [8, 8], strides = [1, 1]} : vector<8x96xbf16> to vector<8x8xbf16>
    %c0_22 = arith.constant 0 : index
    %c2 = arith.constant 2 : index
    %c0_23 = arith.constant 0 : index
    %c0_24 = arith.constant 0 : index
    %48 = vector.load %arg7[%c0_22, %c2, %c0_23, %c0_24] : memref<1x12x8x8xbf16, #tpu.memory_space<vmem>>, vector<1x1x8x8xbf16>
    %49 = vector.shape_cast %48 : vector<1x1x8x8xbf16> to vector<8x8xbf16>
    %50 = vector.shape_cast %47 : vector<8x8xbf16> to vector<1x1x8x8xbf16>
    tpu.vector_store %arg7[%c0_22, %c2, %c0_23, %c0_24], %50 {strides = array<i32>} : memref<1x12x8x8xbf16, #tpu.memory_space<vmem>>, vector<1x1x8x8xbf16>,
    %51 = vector.extract_strided_slice %38 {offsets = [0, 24], sizes = [8, 8], strides = [1, 1]} : vector<8x96xbf16> to vector<8x8xbf16>
    %c0_25 = arith.constant 0 : index
    %c3 = arith.constant 3 : index
    %c0_26 = arith.constant 0 : index
    %c0_27 = arith.constant 0 : index
    %52 = vector.load %arg7[%c0_25, %c3, %c0_26, %c0_27] : memref<1x12x8x8xbf16, #tpu.memory_space<vmem>>, vector<1x1x8x8xbf16>
    %53 = vector.shape_cast %52 : vector<1x1x8x8xbf16> to vector<8x8xbf16>
    %54 = vector.shape_cast %51 : vector<8x8xbf16> to vector<1x1x8x8xbf16>
    tpu.vector_store %arg7[%c0_25, %c3, %c0_26, %c0_27], %54 {strides = array<i32>} : memref<1x12x8x8xbf16, #tpu.memory_space<vmem>>, vector<1x1x8x8xbf16>,
    %55 = vector.extract_strided_slice %38 {offsets = [0, 32], sizes = [8, 8], strides = [1, 1]} : vector<8x96xbf16> to vector<8x8xbf16>
    %c0_28 = arith.constant 0 : index
    %c4 = arith.constant 4 : index
    %c0_29 = arith.constant 0 : index
    %c0_30 = arith.constant 0 : index
    %56 = vector.load %arg7[%c0_28, %c4, %c0_29, %c0_30] : memref<1x12x8x8xbf16, #tpu.memory_space<vmem>>, vector<1x1x8x8xbf16>
    %57 = vector.shape_cast %56 : vector<1x1x8x8xbf16> to vector<8x8xbf16>
    %58 = vector.shape_cast %55 : vector<8x8xbf16> to vector<1x1x8x8xbf16>
    tpu.vector_store %arg7[%c0_28, %c4, %c0_29, %c0_30], %58 {strides = array<i32>} : memref<1x12x8x8xbf16, #tpu.memory_space<vmem>>, vector<1x1x8x8xbf16>,
    %59 = vector.extract_strided_slice %38 {offsets = [0, 40], sizes = [8, 8], strides = [1, 1]} : vector<8x96xbf16> to vector<8x8xbf16>
    %c0_31 = arith.constant 0 : index
    %c5 = arith.constant 5 : index
    %c0_32 = arith.constant 0 : index
    %c0_33 = arith.constant 0 : index
    %60 = vector.load %arg7[%c0_31, %c5, %c0_32, %c0_33] : memref<1x12x8x8xbf16, #tpu.memory_space<vmem>>, vector<1x1x8x8xbf16>
    %61 = vector.shape_cast %60 : vector<1x1x8x8xbf16> to vector<8x8xbf16>
    %62 = vector.shape_cast %59 : vector<8x8xbf16> to vector<1x1x8x8xbf16>
    tpu.vector_store %arg7[%c0_31, %c5, %c0_32, %c0_33], %62 {strides = array<i32>} : memref<1x12x8x8xbf16, #tpu.memory_space<vmem>>, vector<1x1x8x8xbf16>,
    %63 = vector.extract_strided_slice %38 {offsets = [0, 48], sizes = [8, 8], strides = [1, 1]} : vector<8x96xbf16> to vector<8x8xbf16>
    %c0_34 = arith.constant 0 : index
    %c6 = arith.constant 6 : index
    %c0_35 = arith.constant 0 : index
    %c0_36 = arith.constant 0 : index
    %64 = vector.load %arg7[%c0_34, %c6, %c0_35, %c0_36] : memref<1x12x8x8xbf16, #tpu.memory_space<vmem>>, vector<1x1x8x8xbf16>
    %65 = vector.shape_cast %64 : vector<1x1x8x8xbf16> to vector<8x8xbf16>
    %66 = vector.shape_cast %63 : vector<8x8xbf16> to vector<1x1x8x8xbf16>
    tpu.vector_store %arg7[%c0_34, %c6, %c0_35, %c0_36], %66 {strides = array<i32>} : memref<1x12x8x8xbf16, #tpu.memory_space<vmem>>, vector<1x1x8x8xbf16>,
    %67 = vector.extract_strided_slice %38 {offsets = [0, 56], sizes = [8, 8], strides = [1, 1]} : vector<8x96xbf16> to vector<8x8xbf16>
    %c0_37 = arith.constant 0 : index
    %c7 = arith.constant 7 : index
    %c0_38 = arith.constant 0 : index
    %c0_39 = arith.constant 0 : index
    %68 = vector.load %arg7[%c0_37, %c7, %c0_38, %c0_39] : memref<1x12x8x8xbf16, #tpu.memory_space<vmem>>, vector<1x1x8x8xbf16>
    %69 = vector.shape_cast %68 : vector<1x1x8x8xbf16> to vector<8x8xbf16>
    %70 = vector.shape_cast %67 : vector<8x8xbf16> to vector<1x1x8x8xbf16>
    tpu.vector_store %arg7[%c0_37, %c7, %c0_38, %c0_39], %70 {strides = array<i32>} : memref<1x12x8x8xbf16, #tpu.memory_space<vmem>>, vector<1x1x8x8xbf16>,
    %71 = vector.extract_strided_slice %38 {offsets = [0, 64], sizes = [8, 8], strides = [1, 1]} : vector<8x96xbf16> to vector<8x8xbf16>
    %c0_40 = arith.constant 0 : index
    %c8 = arith.constant 8 : index
    %c0_41 = arith.constant 0 : index
    %c0_42 = arith.constant 0 : index
    %72 = vector.load %arg7[%c0_40, %c8, %c0_41, %c0_42] : memref<1x12x8x8xbf16, #tpu.memory_space<vmem>>, vector<1x1x8x8xbf16>
    %73 = vector.shape_cast %72 : vector<1x1x8x8xbf16> to vector<8x8xbf16>
    %74 = vector.shape_cast %71 : vector<8x8xbf16> to vector<1x1x8x8xbf16>
    tpu.vector_store %arg7[%c0_40, %c8, %c0_41, %c0_42], %74 {strides = array<i32>} : memref<1x12x8x8xbf16, #tpu.memory_space<vmem>>, vector<1x1x8x8xbf16>,
    %75 = vector.extract_strided_slice %38 {offsets = [0, 72], sizes = [8, 8], strides = [1, 1]} : vector<8x96xbf16> to vector<8x8xbf16>
    %c0_43 = arith.constant 0 : index
    %c9 = arith.constant 9 : index
    %c0_44 = arith.constant 0 : index
    %c0_45 = arith.constant 0 : index
    %76 = vector.load %arg7[%c0_43, %c9, %c0_44, %c0_45] : memref<1x12x8x8xbf16, #tpu.memory_space<vmem>>, vector<1x1x8x8xbf16>
    %77 = vector.shape_cast %76 : vector<1x1x8x8xbf16> to vector<8x8xbf16>
    %78 = vector.shape_cast %75 : vector<8x8xbf16> to vector<1x1x8x8xbf16>
    tpu.vector_store %arg7[%c0_43, %c9, %c0_44, %c0_45], %78 {strides = array<i32>} : memref<1x12x8x8xbf16, #tpu.memory_space<vmem>>, vector<1x1x8x8xbf16>,
    %79 = vector.extract_strided_slice %38 {offsets = [0, 80], sizes = [8, 8], strides = [1, 1]} : vector<8x96xbf16> to vector<8x8xbf16>
    %c0_46 = arith.constant 0 : index
    %c10 = arith.constant 10 : index
    %c0_47 = arith.constant 0 : index
    %c0_48 = arith.constant 0 : index
    %80 = vector.load %arg7[%c0_46, %c10, %c0_47, %c0_48] : memref<1x12x8x8xbf16, #tpu.memory_space<vmem>>, vector<1x1x8x8xbf16>
    %81 = vector.shape_cast %80 : vector<1x1x8x8xbf16> to vector<8x8xbf16>
    %82 = vector.shape_cast %79 : vector<8x8xbf16> to vector<1x1x8x8xbf16>
    tpu.vector_store %arg7[%c0_46, %c10, %c0_47, %c0_48], %82 {strides = array<i32>} : memref<1x12x8x8xbf16, #tpu.memory_space<vmem>>, vector<1x1x8x8xbf16>,
    %83 = vector.extract_strided_slice %38 {offsets = [0, 88], sizes = [8, 8], strides = [1, 1]} : vector<8x96xbf16> to vector<8x8xbf16>
    %c0_49 = arith.constant 0 : index
    %c11 = arith.constant 11 : index
    %c0_50 = arith.constant 0 : index
    %c0_51 = arith.constant 0 : index
    %84 = vector.load %arg7[%c0_49, %c11, %c0_50, %c0_51] : memref<1x12x8x8xbf16, #tpu.memory_space<vmem>>, vector<1x1x8x8xbf16>
    %85 = vector.shape_cast %84 : vector<1x1x8x8xbf16> to vector<8x8xbf16>
    %86 = vector.shape_cast %83 : vector<8x8xbf16> to vector<1x1x8x8xbf16>
    tpu.vector_store %arg7[%c0_49, %c11, %c0_50, %c0_51], %86 {strides = array<i32>} : memref<1x12x8x8xbf16, #tpu.memory_space<vmem>>, vector<1x1x8x8xbf16>,
    return
  }
  func.func @transform_0(%arg0: i32, %arg1: i32) -> (i32, i32, i32) {
    %c0_i32 = arith.constant 0 : i32
    %c0_i32_0 = arith.constant 0 : i32
    return %arg0, %arg1, %c0_i32 : i32, i32, i32
  }
  func.func @transform_1(%arg0: i32, %arg1: i32) -> (i32, i32) {
    %c0_i32 = arith.constant 0 : i32
    %c0_i32_0 = arith.constant 0 : i32
    %c0_i32_1 = arith.constant 0 : i32
    return %c0_i32, %c0_i32_0 : i32, i32
  }
  func.func @transform_2(%arg0: i32, %arg1: i32) -> (i32, i32) {
    %c0_i32 = arith.constant 0 : i32
    %c0_i32_0 = arith.constant 0 : i32
    %c0_i32_1 = arith.constant 0 : i32
    return %c0_i32, %c0_i32_0 : i32, i32
  }
  func.func @transform_3(%arg0: i32, %arg1: i32) -> (i32, i32) {
    %c0_i32 = arith.constant 0 : i32
    %c0_i32_0 = arith.constant 0 : i32
    %c0_i32_1 = arith.constant 0 : i32
    return %c0_i32, %c0_i32_0 : i32, i32
  }
  func.func @transform_4(%arg0: i32, %arg1: i32) -> (i32, i32) {
    %c0_i32 = arith.constant 0 : i32
    %c0_i32_0 = arith.constant 0 : i32
    %c0_i32_1 = arith.constant 0 : i32
    return %c0_i32, %c0_i32_0 : i32, i32
  }
  func.func @transform_5(%arg0: i32, %arg1: i32) -> (i32, i32, i32, i32) {
    %c0_i32 = arith.constant 0 : i32
    %c0_i32_0 = arith.constant 0 : i32
    %c0_i32_1 = arith.constant 0 : i32
    return %arg0, %c0_i32, %arg1, %c0_i32_0 : i32, i32, i32, i32
  }
}

</mosaic_0001>

<bundles_post_ra>
// kernel: tpu_custom_call.1
= control target key start
LH: loop header
LB: loop body
LE: loop exit
PB: predicated region body
PF: predicated region fallthrough
CT: control target
= control target key end

     0   :  { %6 = vsyncpa [#allocation3], 0  ;;  %s124_s0 = inlined_call_operand.hbm [shape: f32[8,128], index: 0, kind: input, shape index: {}]   ;;  %s125_s1 = inlined_call_operand.hbm [shape: f32[8,128], index: 1, kind: output, shape index: {}]  }
   0x1   :  { %7 = vsyncpa [#allocation4], 0  ;;  %s88_s6 = smov [#allocation2]   ;;  %s40_s10 = scalar_lea.hbm %s124_s0, 128 }
   0x2   :  { %s14_s7 = sshll.u32 %s88_s6, 4  ;;  %p41_p0 = scmp.ne.s32.totalorder %s124_s0, %s40_s10  ;;  %s15_s7 = int_to_ptr.vmem [resolvable:$true] %s14_s7 }
   0x3   :  { %p44_p1 = scmp.lt.u32.totalorder %s40_s10, %s124_s0 }
   0x5   :  { %p46_p2 = pnand %p44_p1, %p41_p0 }
   0x7   :  { %49 = shalt.err (!%p46_p2)
}
   0x8   :  { %s50_s15 = scalar_lea.vmem %s15_s7, 128  ;;  %p55_p4 = scmp.lt.s32.totalorder %s15_s7, %s15_s7 }
   0x9   :  { %p51_p3 = scmp.ne.s32.totalorder %s15_s7, %s50_s15  ;;  %p56_p5 = scmp.lt.s32.totalorder %s50_s15, %s50_s15 }
   0xb   :  { %p57_p6 = por %p56_p5, %p55_p4 }
   0xd   :  { %p58_p7 = pnand %p57_p6, %p51_p3 }
   0xf   :  { %61 = shalt.err (!%p58_p7)
}
  0x10   :  { %17 = dma.hbm_to_vmem [thread:$0]  %s124_s0, 128, %s15_s7, [#allocation3]  }
  0x11   :  { %84 = dma.done.wait [#allocation3], 128  }
  0x12   :  { %85 = vsyncadd [#allocation3], 4294967168  ;;  %s89_s18 = smov [#allocation5]   ;;  %v21_v0 = vld [vmem:[#allocation2] sm:$0xff] }
  0x13   :  { %s29_s19 = sshll.u32 %s89_s18, 4  ;;  %22 = vst [vmem:[#allocation5] sm:$0xff] %v21_v0  ;;  %s30_s19 = int_to_ptr.vmem [resolvable:$true] %s29_s19 }
  0x14   :  { %s62_s20 = scalar_lea.vmem %s30_s19, 128  ;;  %p67_p9 = scmp.lt.s32.totalorder %s30_s19, %s30_s19 }
  0x15   :  { %p63_p8 = scmp.ne.s32.totalorder %s30_s19, %s62_s20  ;;  %p68_p10 = scmp.lt.s32.totalorder %s62_s20, %s62_s20 }
  0x17   :  { %p69_p11 = por %p68_p10, %p67_p9 }
  0x19   :  { %p70_p12 = pnand %p69_p11, %p63_p8 }
  0x1b   :  { %73 = shalt.err (!%p70_p12)
}
  0x1c   :  { %s74_s23 = scalar_lea.hbm %s125_s1, 128 }
  0x1d   :  { %p75_p13 = scmp.ne.s32.totalorder %s125_s1, %s74_s23  ;;  %p78_p0 = scmp.lt.u32.totalorder %s74_s23, %s125_s1 }
  0x1f   :  { %p80_p1 = pnand %p78_p0, %p75_p13 }
  0x21   :  { %83 = shalt.err (!%p80_p1)
}
  0x22   :  { %32 = dma.vmem_to_hbm [thread:$0]  %s30_s19, 128, %s125_s1, [#allocation4]  }
  0x23   :  { %86 = dma.done.wait [#allocation4], 128  }
  0x24   :  { %87 = vsyncadd [#allocation4], 4294967168 }
  0x25   :  { %36 = vsyncpa [#allocation3], 1 }
  0x26   :  { %37 = vsyncpa [#allocation4], 1 }

// kernel: tpu_custom_call.1
= control target key start
LH: loop header
LB: loop body
LE: loop exit
PB: predicated region body
PF: predicated region fallthrough
CT: control target
= control target key end

     0   :  { %s1186_s0 = inlined_call_operand.hbm [shape: f32[2,16,32], index: 0, kind: input, shape index: {}]   ;;  %s1187_s1 = inlined_call_operand.vmem [shape: f32[1,32], index: 1, kind: input, shape index: {}]   ;;  %s1188_s2 = inlined_call_operand.vmem [shape: f32[1,32], index: 2, kind: input, shape index: {}]   ;;  %s1189_s3 = inlined_call_operand.hbm [shape: bf16[32,96], index: 3, kind: input, shape index: {}]   ;;  %s1190_s4 = inlined_call_operand.vmem [shape: f32[1,96], index: 4, kind: input, shape index: {}]   ;;  %s1191_s5 = inlined_call_operand.vmem [shape: bf16[2,12,16,8], index: 5, kind: output, shape index: {}]  }
   0x1   :  { %1197 = sst [smem:[#allocation11_spill]] %s1189_s3 }
   0x2   :  { %1198 = sst [smem:[#allocation12_spill]] %s1191_s5 }
   0x3   :  { %10 = vsyncpa [#allocation3], 0 }
   0x4   :  { %12 = vsyncpa [#allocation3 + $0x1], 0 }
   0x5   :  { %13 = vsyncpa [#allocation5], 0  ;;  %s935_s18 = smov 0   ;;  %s937_s19 = smov 0  }
   0x6   :  { %s939_s20 = smov 0   ;;  %s941_s21 = smov 0  }
   0x7   :  { %s943_s22 = smov 0   ;;  %s945_s23 = smov 0  }
   0x8   :  { %s947_s24 = smov 0   ;;  %s949_s25 = smov 0  }
   0x9 LB: > { %1199 = sst [smem:[#allocation9_spill]] %s870_s21  ;;  %s611_s26 = sadd.s32 4294967295, %s886_s25   ;;  %s886_s25 = sphi %s949_s25, %s19_s25   ;;  %s882_s24 = sphi %s947_s24, %s1221_s24   ;;  %s878_s23 = sphi %s945_s23, %s1220_s23   ;;  %s874_s22 = sphi %s943_s22, %s1219_s22   ;;  %s870_s21 = sphi %s941_s21, %s1218_s21   ;;  %s866_s20 = sphi %s939_s20, %s1217_s20   ;;  %s862_s19 = sphi %s937_s19, %s1216_s19   ;;  %s858_s18 = sphi %s935_s18, %s1215_s18  }
   0xa   : > { %p53_p0 = scmp.ne.s32.totalorder %s862_s19, %s858_s18  ;;  %p977_p1 = scmp.eq.s32.totalorder %s611_s26, 0 }
   0xb   : > { %p613_p2 = scmp.ge.s32.totalorder %s886_s25, 1  ;;  %p176_p3 = scmp.lt.s32.totalorder %s886_s25, 5 }
   0xc   : > { %s1200_s27 = scalar_select %p977_p1, 1, 0 }
   0xd   : > { %p985_p4 = por %p977_p1, %p53_p0  ;;  %p989_p5 = pnand %p613_p2, %p176_p3 }
   0xe   : > { %s888_s30 = smov [#allocation4]   ;;  %s1204_s3 = sld [smem:[#allocation11_spill]] }
   0xf   : > { %s1201_s28 = scalar_select %p985_p4, 1, 0 }
  0x10   : > { %s1202_s29 = scalar_select %p989_p5, 1, 0 }
  0x11   : > { %s194_s6 = sshll.u32 %s888_s30, 4  ;;  %p663_p6 = pneg %p989_p5  ;;  %s195_s6 = int_to_ptr.vmem [resolvable:$true] %s194_s6 }
  0x13   : > { %p997_p7 = pnand %p663_p6, %p977_p1 }
  0x14   : > { %s758_s10 = scalar_lea.hbm %s1204_s3, 256 }
  0x15   : > { %p759_p8 = scmp.ne.s32.totalorder %s1204_s3, %s758_s10  ;;  %p760_p9 = pneg %p997_p7 }
  0x16   : > { %p765_p12 = scmp.lt.u32.totalorder %s758_s10, %s1204_s3 }
  0x17   : > { %p761_p10 = pnand %p760_p9, %p759_p8 }
  0x19   : > { %p762_p11 = pneg %p761_p10 }
  0x1b   : > { %p767_p13 = pnand %p765_p12, %p762_p11 }
  0x1d   : > { %770 = shalt.err (!%p767_p13)
}
  0x1e   : > { %s771_s15 = scalar_lea.vmem %s195_s6, 256  ;;  %p779_p6 = scmp.lt.s32.totalorder %s195_s6, %s195_s6 }
  0x1f   : > { %p772_p0 = scmp.ne.s32.totalorder %s195_s6, %s771_s15  ;;  %p780_p1 = scmp.lt.s32.totalorder %s771_s15, %s771_s15 }
  0x21   : > { %p774_p2 = pnand %p772_p0, %p760_p9  ;;  %p781_p4 = por %p780_p1, %p779_p6 }
  0x23   : > { %p775_p3 = pneg %p774_p2 }
  0x25   : > { %p782_p5 = pnand %p781_p4, %p775_p3 }
  0x27   : > { %785 = shalt.err (!%p782_p5)
}
  0x28   : > { %s889_s16 = smov 64   ;;  %s890_s17 = smov 4  }
  0x29   : > { %666 = dma.hbm_to_vmem [thread:$0]  (!%p997_p7), %s1204_s3, 256, %s195_s6, [#allocation5], %s889_s16, %s889_s16, %s890_s17  }
  0x2a   : > { %p163_p1 = scmp.eq.s32.totalorder %s611_s26, 3  ;;  %s28_s8 = sadd.s32 1, %s878_s23 }
  0x2b   : > { %p29_p4 = scmp.ge.s32.totalorder %s28_s8, 2  ;;  %s31_s9 = sadd.s32 1, %s882_s24 }
  0x2c   : > { %p47_p5 = scmp.ne.s32.totalorder %s866_s20, %s862_s19  ;;  %p48_p8 = scmp.eq.s32.totalorder %s886_s25, 0 }
  0x2d   : > { %s1223_s8 = smov (%p29_p4, %s28_s8), 0  ;;  %s1225_s9 = smov (!%p29_p4, %s31_s9), %s882_s24 }
  0x2e   : > { %1205 = sst [smem:[#allocation10_spill]] %s1223_s8  ;;  %s36_s7 = ssub.s32 %s878_s23, %s1223_s8 }
  0x2f   : > { %s40_s10 = sadd.s32 1, %s866_s20  ;;  %p33_p9 = scmp.ge.s32.totalorder %s1225_s9, 2 }
  0x30   : > { %p1030_p7 = por %p163_p1, %p47_p5  ;;  %p1034_p10 = por %p48_p8, %p47_p5 }
  0x31   : > { %s211_s11 = sand.u32 1, %s866_s20   ;;  %s1227_s9 = smov (%p33_p9, %s1225_s9), 0 }
  0x32   : > { %p672_p11 = scmp.lt.s32.totalorder %s886_s25, 4  ;;  %s616_s12 = sshll.u32 %s211_s11, 3 }
  0x33   : > { %s35_s13 = ssub.s32 %s882_s24, %s1227_s9  ;;  %s617_s15 = sshll.u32 %s882_s24, 1 }
  0x34   : > { %s37_s14 = sor.u32 %s36_s7, %s35_s13  ;;  %s220_s16 = sadd.s32 %s878_s23, %s617_s15 }
  0x35   : > { %p38_p12 = scmp.eq.s32.totalorder %s37_s14, 0  ;;  %s618_s17 = sshll.u32 %s220_s16, 7 }
  0x36   : > { %s215_s18 = scalar_lea.vmem [#allocation2], %s616_s12  ;;  %s1052_s21 = scalar_lea.hbm %s1186_s0, %s618_s17 }
  0x37   : > { %s224_s30 = sshll.u32 %s215_s18, 4  ;;  %p1060_p13 = pnand %p672_p11, %p1034_p10  ;;  %s1054_s30 = int_to_ptr.vmem [resolvable:$true] %s224_s30 }
  0x38   : > { %s1047_s3 = scalar_select %p38_p12, %s866_s20, %s40_s10  }
  0x39   : > { %s212_s10 = scalar_lea.sflag [#allocation3], %s211_s11  ;;  %s786_s12 = scalar_lea.hbm %s1052_s21, 128 }
  0x3a   : > { %p787_p0 = scmp.ne.s32.totalorder %s1052_s21, %s786_s12  ;;  %p788_p2 = pneg %p1060_p13 }
  0x3b   : > { %s791_s26 = scalar_lea.hbm %s1186_s0, 512  ;;  %p792_p1 = scmp.lt.u32.totalorder %s1052_s21, %s1186_s0 }
  0x3c   : > { %p789_p3 = pnand %p788_p2, %p787_p0  ;;  %p793_p4 = scmp.lt.u32.totalorder %s791_s26, %s786_s12 }
  0x3d   : > { %p795_p8 = scmp.lt.u32.totalorder %s786_s12, %s1052_s21 }
  0x3e   : > { %p790_p6 = pneg %p789_p3  ;;  %p794_p5 = por %p793_p4, %p792_p1 }
  0x40   : > { %p796_p9 = por %p795_p8, %p794_p5 }
  0x42   : > { %p797_p10 = pnand %p796_p9, %p790_p6 }
  0x44   : > { %800 = shalt.err (!%p797_p10)
}
  0x45   : > { %s801_s11 = scalar_lea.vmem %s1054_s30, 128  ;;  %s891_s15 = smov [#allocation2]  }
  0x46   : > { %p802_p11 = scmp.ne.s32.totalorder %s1054_s30, %s801_s11  ;;  %s806_s16 = sshll.u32 %s891_s15, 4  ;;  %s807_s16 = int_to_ptr.vmem [resolvable:$false] %s806_s16 }
  0x47   : > { %s808_s17 = scalar_lea.vmem %s807_s16, 256  ;;  %p809_p3 = scmp.lt.s32.totalorder %s1054_s30, %s807_s16 }
  0x48   : > { %p804_p12 = pnand %p802_p11, %p788_p2  ;;  %p810_p1 = scmp.lt.s32.totalorder %s808_s17, %s801_s11 }
  0x4a   : > { %p805_p0 = pneg %p804_p12  ;;  %p811_p4 = por %p810_p1, %p809_p3 }
  0x4c   : > { %p812_p5 = pnand %p811_p4, %p805_p0 }
  0x4e   : > { %815 = shalt.err (!%p812_p5)
}
  0x4f   : > { %670 = dma.hbm_to_vmem [thread:$0]  (!%p1060_p13), %s1052_s21, 128, %s1054_s30, %s212_s10  }
  0x50   : > { %p1209_p6 = scmp.ne.s32.totalorder %s1202_s29, 0 }
  0x51   : > { %s1092_s18 = sand.u32 (!%p1209_p6), 1, %s862_s19   ;;  %p1210_p2 = scmp.ne.s32.totalorder (!%p1209_p6), %s1201_s28, 0 }
  0x52   : > { %233 = sbr.rel (%p1209_p6) target bundleno = 781 (0x30d), region = 40  ;;  %s620_s12 = sshll.u32 (!%p1209_p6), %s1092_s18, 3 }
  0x53   : > { %s236_s5 = scalar_lea.sflag (!%p1209_p6), [#allocation3], %s1092_s18  ;;  %s239_s8 = scalar_lea.vmem (!%p1209_p6), [#allocation2], %s620_s12 }
  0x59   : > { %849 = dma.done.wait (%p1210_p2), %s236_s5, 128  }
  0x5a   : > { %851 = vsyncadd (%p1210_p2), %s236_s5, 4294967168  ;;  %p1211_p8 = scmp.ne.s32.totalorder %s1200_s27, 0 }
  0x5c   : > { %853 = dma.done.wait (%p1211_p8), [#allocation5], 256  }
  0x5d   : > { %855 = vsyncadd (%p1211_p8), [#allocation5], 4294967040  ;;  %vm273_vm0 = vcmask 261120   ;;  %v270_v0 = vld [vmem:[%s239_s8] sm:$0xff]  ;;  %v754_v7 = vld [vmem:[#allocation4] sm:$0xff]   ;;  %v892_v8 = vmov 0.0  }
  0x5e   : > { %v274_v1 = vsel %vm273_vm0, %v270_v0, 0.0  ;;  %647 = vmatprep.subr.bf16.mxu0 %v892_v8  ;;  %vm893_vm1 = vmmov 0   ;;  %v755_v9 = vld [vmem:[#allocation4 + $0x8] sm:$0xff]   ;;  %v622_v14 = vld [vmem:[%s1187_s1] ss:$0 sm:$0xff]  ;;  %s655_s10 = smul.u32 48, %s1092_s18 }
  0x5f   : > { %275 = vadd.xlane.f32.xlu0 %v274_v1  ;;  %651 = vmatprep.mubr.msk.bf16.mxu0 %vm893_vm1, %v892_v8  ;;  %v623_v16 = vld [vmem:[%s1188_s2] ss:$0 sm:$0xff]  ;;  %vm370_vm2 = vcmask 60416   ;;  %s894_s26 = smov 104   ;;  %s895_s13 = smov 120  }
  0x60   : > { %648 = vmatpush3.bf16.msra.mxu0 %v754_v7  ;;  %v624_v20 = vld [vmem:[%s1190_s4] ss:$0 sm:$0xff]  ;;  %s1117_s14 = scalar_lea.vmem [#allocation6], %s655_s10  ;;  %s896_s11 = smov 48  }
  0x61   : > { %649 = vmatprep.subr.bf16.mxu0 %v892_v8  ;;  %s897_s15 = smov 112   ;;  %s898_s16 = smov 96  }
  0x62   : > { %s899_s17 = smov 88   ;;  %s900_s18 = smov 80  }
  0x63   : > { %s901_s12 = smov 72   ;;  %s902_s5 = smov 64  }
  0x64   : > { %650 = vmatpush3.bf16.msra.mxu0 %v755_v9  ;;  %s903_s8 = smov 56   ;;  %s904_s21 = smov 40  }
  0x65   : > { %s1212_s27 = sld [smem:[#allocation9_spill]] (%p1030_p7)  ;;  %s656_s28 = smul.u32 (%p1030_p7), 24, %s874_s22 }
  0x66   : > { %s1213_s10 = sld [smem:[#allocation12_spill]] (%p1030_p7) }
  0x6b   : > { %s438_s6 = sadd.s32 (%p1030_p7), %s1212_s27, %s656_s28 }
  0x6c   : > { %s640_s29 = sshll.u32 (%p1030_p7), %s438_s6, 2 }
  0xec   : > { %v276_v2 = vpop.xlane.xlu0 %275 }
  0xed   : > { %v278_v3 = vmul.f32 0.03125, %v276_v2 }
  0xef   : > { %v279_v4 = vsub.f32 %v270_v0, %v278_v3 }
  0xf1   : > { %v280_v5 = vmul.f32 %v279_v4, %v279_v4 }
  0xf3   : > { %v281_v6 = vsel %vm273_vm0, %v280_v5, 0.0 }
  0xf4   : > { %282 = vadd.xlane.f32.xlu0 %v281_v6 }
 0x181   : > { %v283_v10 = vpop.xlane.xlu0 %282 }
 0x182   : > { %v284_v11 = vmul.f32 0.03125, %v283_v10 }
 0x184   : > { %v285_v12 = vadd.f32 1e-05, %v284_v11 }
 0x186   : > { %756 = vrsqrt.f32 %v285_v12 }
 0x190   : > { %v757_v13 = vpop.eup %756 }
 0x191   : > { %v287_v15 = vmul.f32 %v757_v13, %v279_v4 }
 0x193   : > { %v294_v17 = vmul.f32 %v622_v14, %v287_v15 }
 0x195   : > { %v301_v18 = vadd.f32 %v623_v16, %v294_v17 }
 0x197   : > { %v302_v19 = vpack.c.bf16 %v301_v18, %v301_v18 }
 0x199   : > { %652 = vmatmul.mubr.msk.bf16.vlgmr.msra.gmra.mrb[0].mxu0 %vm273_vm0, %v302_v19 }
 0x26c   : > { %v363_v21 = vpop.f32.mrb[0].mxu0 }
 0x26d   : > { %v364_v22 = vadd.f32 %v624_v20, %v363_v21  ;;  %v653_v23 = vpop.f32.mrb[1].mxu0 }
 0x26e   : > { %v366_v24 = vpop.f32.mrb[2].mxu0 }
 0x26f   : > { %v369_v25 = vpack.c.bf16 %v364_v22, %v364_v22  ;;  %v654_v26 = vpop.f32.mrb[3].mxu0 }
 0x271   : > { %385 = vrot.lane.b32.xlu0 %v369_v25, %s894_s26  ;;  %375 = vrot.lane.b32.xlu1 %v369_v25, %s895_s13  ;;  %371 = vst.msk [vmem:[%s1117_s14] sm:$0xf] %vm370_vm2, %v369_v25  ;;  %s440_s26 = scalar_lea.vmem (%p1030_p7), %s1213_s10, %s640_s29 }
 0x275   : > { %420 = vrot.lane.b32.xlu0 %v369_v25, %s896_s11  ;;  %380 = vrot.lane.b32.xlu1 %v369_v25, %s897_s15 }
 0x278   : > { %v456_v38 = vld [vmem:[%s1117_s14] sm:$0xf] (%p1030_p7) }
 0x279   : > { %390 = vrot.lane.b32.xlu1 %v369_v25, %s898_s16  ;;  %457 = vst [vmem:[%s440_s26] sm:$0xf] (%p1030_p7), %v456_v38 }
 0x27d   : > { %395 = vrot.lane.b32.xlu1 %v369_v25, %s899_s17 }
 0x281   : > { %400 = vrot.lane.b32.xlu1 %v369_v25, %s900_s18 }
 0x285   : > { %405 = vrot.lane.b32.xlu1 %v369_v25, %s901_s12 }
 0x289   : > { %410 = vrot.lane.b32.xlu1 %v369_v25, %s902_s5 }
 0x28d   : > { %415 = vrot.lane.b32.xlu1 %v369_v25, %s903_s8 }
 0x291   : > { %425 = vrot.lane.b32.xlu1 %v369_v25, %s904_s21 }
 0x2e3   : > { %v386_v27 = vpop.permute.xlu0 %385  ;;  %v376_v28 = vpop.permute.xlu1 %375 }
 0x2e4   : > { %631 = vst.msk [vmem:[%s1117_s14 + $0xc] sm:$0xf] %vm370_vm2, %v386_v27  ;;  %629 = vst.msk [vmem:[%s1117_s14 + $0x4] sm:$0xf] %vm370_vm2, %v376_v28 }
 0x2e7   : > { %v421_v29 = vpop.permute.xlu0 %420  ;;  %v381_v30 = vpop.permute.xlu1 %380 }
 0x2e8   : > { %638 = vst.msk [vmem:[%s1117_s14 + $0x28] sm:$0xf] %vm370_vm2, %v421_v29  ;;  %630 = vst.msk [vmem:[%s1117_s14 + $0x8] sm:$0xf] %vm370_vm2, %v381_v30 }
 0x2eb   : > { %v391_v31 = vpop.permute.xlu1 %390  ;;  %v458_v39 = vld [vmem:[%s1117_s14 + $0x4] sm:$0xf] (%p1030_p7)  ;;  %v462_v41 = vld [vmem:[%s1117_s14 + $0xc] sm:$0xf] (%p1030_p7) }
 0x2ec   : > { %632 = vst.msk [vmem:[%s1117_s14 + $0x10] sm:$0xf] %vm370_vm2, %v391_v31  ;;  %459 = vst [vmem:[%s440_s26 + $0x8] sm:$0xf] (%p1030_p7), %v458_v39 }
 0x2ed   : > { %463 = vst [vmem:[%s440_s26 + $0x18] sm:$0xf] (%p1030_p7), %v462_v41 }
 0x2ef   : > { %v396_v32 = vpop.permute.xlu1 %395  ;;  %v460_v40 = vld [vmem:[%s1117_s14 + $0x8] sm:$0xf] (%p1030_p7) }
 0x2f0   : > { %633 = vst.msk [vmem:[%s1117_s14 + $0x14] sm:$0xf] %vm370_vm2, %v396_v32  ;;  %v476_v48 = vld [vmem:[%s1117_s14 + $0x28] sm:$0xf] (%p1030_p7)  ;;  %461 = vst [vmem:[%s440_s26 + $0x10] sm:$0xf] (%p1030_p7), %v460_v40 }
 0x2f1   : > { %477 = vst [vmem:[%s440_s26 + $0x50] sm:$0xf] (%p1030_p7), %v476_v48 }
 0x2f3   : > { %v401_v33 = vpop.permute.xlu1 %400  ;;  %v464_v42 = vld [vmem:[%s1117_s14 + $0x10] sm:$0xf] (%p1030_p7) }
 0x2f4   : > { %634 = vst.msk [vmem:[%s1117_s14 + $0x18] sm:$0xf] %vm370_vm2, %v401_v33  ;;  %465 = vst [vmem:[%s440_s26 + $0x20] sm:$0xf] (%p1030_p7), %v464_v42 }
 0x2f7   : > { %v406_v34 = vpop.permute.xlu1 %405  ;;  %v466_v43 = vld [vmem:[%s1117_s14 + $0x14] sm:$0xf] (%p1030_p7) }
 0x2f8   : > { %635 = vst.msk [vmem:[%s1117_s14 + $0x1c] sm:$0xf] %vm370_vm2, %v406_v34  ;;  %467 = vst [vmem:[%s440_s26 + $0x28] sm:$0xf] (%p1030_p7), %v466_v43 }
 0x2fb   : > { %v411_v35 = vpop.permute.xlu1 %410  ;;  %v468_v44 = vld [vmem:[%s1117_s14 + $0x18] sm:$0xf] (%p1030_p7) }
 0x2fc   : > { %636 = vst.msk [vmem:[%s1117_s14 + $0x20] sm:$0xf] %vm370_vm2, %v411_v35  ;;  %469 = vst [vmem:[%s440_s26 + $0x30] sm:$0xf] (%p1030_p7), %v468_v44 }
 0x2fe   : > { %436 = sbr.rel (!%p1030_p7) target bundleno = 781 (0x30d), region = 52 }
 0x2ff   : > { %v416_v36 = vpop.permute.xlu1 %415  ;;  %v470_v45 = vld [vmem:[%s1117_s14 + $0x1c] sm:$0xf] (%p1030_p7) }
 0x300   : > { %637 = vst.msk [vmem:[%s1117_s14 + $0x24] sm:$0xf] %vm370_vm2, %v416_v36  ;;  %471 = vst [vmem:[%s440_s26 + $0x38] sm:$0xf] (%p1030_p7), %v470_v45 }
 0x303   : > { %v426_v37 = vpop.permute.xlu1 %425  ;;  %v472_v46 = vld [vmem:[%s1117_s14 + $0x20] sm:$0xf] (%p1030_p7) }
 0x304   : > { %639 = vst.msk [vmem:[%s1117_s14 + $0x2c] sm:$0xf] %vm370_vm2, %v426_v37  ;;  %473 = vst [vmem:[%s440_s26 + $0x40] sm:$0xf] (%p1030_p7), %v472_v46 }
 0x307   : > { %v474_v47 = vld [vmem:[%s1117_s14 + $0x24] sm:$0xf] }
 0x308   : > { %475 = vst [vmem:[%s440_s26 + $0x48] sm:$0xf] %v474_v47 }
 0x30b   : > { %v478_v49 = vld [vmem:[%s1117_s14 + $0x2c] sm:$0xf] }
 0x30c   : > { %479 = vst [vmem:[%s440_s26 + $0x58] sm:$0xf] %v478_v49 }
 0x30d PF: > { %s19_s25 = sadd.s32 1, %s886_s25   ;;  %s1214_s13 = sld [smem:[#allocation10_spill]] }
 0x30e   : > { %p16_p7 = scmp.ge.s32.totalorder %s19_s25, 6   ;;  %s1215_s18 = smov %s862_s19 }
 0x30f   : > { %s1216_s19 = smov %s866_s20  ;;  %s1217_s20 = smov %s1047_s3 }
 0x310   : > { %s1218_s21 = smov %s878_s23  ;;  %s1219_s22 = smov %s882_s24 }
 0x311   : > { %s1221_s24 = smov %s1227_s9  ;;  %18 = sbr.rel (!%p16_p7) target bundleno = 9 (0x9), region = 136 }
 0x313   : > { %s1220_s23 = smov %s1214_s13 }
 0x318   :  { %536 = vsyncpa [#allocation3], 1 }
 0x319   :  { %538 = vsyncpa [#allocation3 + $0x1], 1 }
 0x31a   :  { %539 = vsyncpa [#allocation5], 1 }

</bundles_post_ra>
